<compile_context>
chip_gen: v5e
topology: v5e:2x2
jax: 0.10.0
libtpu: 0.0.40
codegen_flags: <defaults>
</compile_context>

<pallas_src>
import functools

import jax
import jax.numpy as jnp
from jax import lax
from jax.experimental import pallas as pl
from jax.experimental.pallas import tpu as pltpu


_FUSED_ADJ_BYTES = 256 * 1024        # per-graph adj size under which we fuse
_FUSED_STEP_BYTES = 2 * 1024 * 1024  # per-grid-step working-set target
_VMEM_LIMIT = 32 * 1024 * 1024       # safe on v5e/v6e (128M) and v7x (64M)


def _round_up(v, m):
    return ((v + m - 1) // m) * m


def _largest_divisor_at_most(n, cap):
    cap = max(1, min(n, cap))
    for d in range(cap, 0, -1):
        if n % d == 0:
            return d
    return 1


def _pick_tile(dim, target, align):
    """Tile size that divides `dim` and is a multiple of `align` (or == dim)."""
    if dim <= target:
        return dim
    t = (target // align) * align
    while t >= align:
        if dim % t == 0:
            return t
        t -= align
    return dim


# --------------------------------------------------------------------------
# Kernels
# --------------------------------------------------------------------------
def _gcn_fused_kernel(x_ref, adj_ref, w_ref, b_ref, out_ref, *, use_bf16):
    # x_ref: (Bt,N,F_in)  adj_ref: (Bt,N,N)  w_ref: (F_in,Fp)  b_ref: (1,Fp)
    # out_ref: (Bt,N,Fp)
    x = x_ref[...]
    adj = adj_ref[...]
    w = w_ref[...]
    b = b_ref[...]

    bt, n, f_in = x.shape
    fp = w.shape[1]
    mx = jnp.bfloat16 if use_bf16 else jnp.float32

    # deg_i = sum_j |a_ij| + |a_ii + 1| - |a_ii|   (exact self-loop degree;
    # the diagonal extraction is needed only for possibly-negative adj).
    adj32 = adj.astype(jnp.float32)
    row = lax.broadcasted_iota(jnp.int32, (n, n), 0)
    col = lax.broadcasted_iota(jnp.int32, (n, n), 1)
    diag = jnp.sum(jnp.where(row == col, adj32, 0.0), axis=-1, keepdims=True)
    deg = (jnp.sum(jnp.abs(adj32), axis=-1, keepdims=True)
           + jnp.abs(diag + 1.0) - jnp.abs(diag))
    d = lax.rsqrt(deg)                                    # (Bt, N, 1) f32

    # support = x @ W as one tall MXU matmul (Bt*N rows).
    support = jnp.dot(x.reshape(bt * n, f_in).astype(mx), w.astype(mx),
                      preferred_element_type=jnp.float32).reshape(bt, n, fp)
    s = d * support                                       # D^-1/2 @ support

    # adj @ (d*support) (batched MXU matmul), then row scaling + self term.
    agg = jnp.einsum("bnm,bmf->bnf", adj.astype(mx), s.astype(mx),
                     preferred_element_type=jnp.float32)
    out_ref[...] = (d * (agg + s) + b).astype(out_ref.dtype)


def _gcn_prep_kernel(adj_ref, x_ref, w_ref, s_ref, d_ref, *, use_bf16):
    # adj_ref: (tm,N)  x_ref: (tm,F_in)  w_ref: (F_in,Fp)
    # s_ref: (tm,Fp)   d_ref: (tm,1)
    adj = adj_ref[...].astype(jnp.float32)
    tm, n = adj.shape
    r0 = pl.program_id(1) * tm                            # global row offset
    row = lax.broadcasted_iota(jnp.int32, (tm, n), 0) + r0
    col = lax.broadcasted_iota(jnp.int32, (tm, n), 1)
    diag = jnp.sum(jnp.where(row == col, adj, 0.0), axis=-1, keepdims=True)
    deg = (jnp.sum(jnp.abs(adj), axis=-1, keepdims=True)
           + jnp.abs(diag + 1.0) - jnp.abs(diag))
    d = lax.rsqrt(deg)                                    # (tm, 1) f32

    mx = jnp.bfloat16 if use_bf16 else jnp.float32
    support = jnp.dot(x_ref[...].astype(mx), w_ref[...].astype(mx),
                      preferred_element_type=jnp.float32)
    s_ref[...] = (d * support).astype(s_ref.dtype)
    d_ref[...] = d.astype(d_ref.dtype)


def _gcn_agg_kernel(adj_ref, s_k_ref, s_i_ref, d_ref, b_ref, out_ref, acc_ref,
                    *, use_bf16):
    # adj_ref: (tm,tk)  s_k_ref: (tk,Fp)  s_i_ref: (tm,Fp)
    # d_ref: (tm,1)     b_ref: (1,Fp)     out_ref: (tm,Fp)  acc_ref: (tm,Fp) f32
    k = pl.program_id(2)

    @pl.when(k == 0)
    def _init():
        acc_ref[...] = jnp.zeros_like(acc_ref)

    mx = jnp.bfloat16 if use_bf16 else jnp.float32
    acc_ref[...] += jnp.dot(adj_ref[...].astype(mx), s_k_ref[...].astype(mx),
                            preferred_element_type=jnp.float32)

    @pl.when(k == pl.num_programs(2) - 1)
    def _finalize():
        out = d_ref[...] * (acc_ref[...] + s_i_ref[...]) + b_ref[...]
        out_ref[...] = out.astype(out_ref.dtype)


# --------------------------------------------------------------------------
# Wrappers
# --------------------------------------------------------------------------
def _fused_path(x, adj, w_p, b2d, use_bf16):
    B, N, F_in = x.shape
    Fp = w_p.shape[1]
    per_batch = N * N * adj.dtype.itemsize + 4 * (N * F_in + 2 * N * Fp)
    bt = _largest_divisor_at_most(B, max(1, _FUSED_STEP_BYTES // max(per_batch, 1)))
    cost = pl.CostEstimate(
        flops=2 * B * N * Fp * (N + F_in),
        transcendentals=B * N,
        bytes_accessed=(adj.size * adj.dtype.itemsize
                        + 4 * (x.size + w_p.size + b2d.size + B * N * Fp)),
    )
    return pl.pallas_call(
        functools.partial(_gcn_fused_kernel, use_bf16=use_bf16),
        out_shape=jax.ShapeDtypeStruct((B, N, Fp), jnp.float32),
        grid_spec=pltpu.PrefetchScalarGridSpec(
            num_scalar_prefetch=0,
            grid=(B // bt,),
            in_specs=[
                pl.BlockSpec((bt, N, F_in), lambda g: (g, 0, 0)),
                pl.BlockSpec((bt, N, N), lambda g: (g, 0, 0)),
                pl.BlockSpec((F_in, Fp), lambda g: (0, 0)),
                pl.BlockSpec((1, Fp), lambda g: (0, 0)),
            ],
            out_specs=pl.BlockSpec((bt, N, Fp), lambda g: (g, 0, 0)),
        ),
        compiler_params=pltpu.CompilerParams(
            dimension_semantics=("parallel",),
            vmem_limit_bytes=_VMEM_LIMIT,
        ),
        cost_estimate=cost,
    )(x, adj, w_p, b2d)


def _tiled_path(x, adj, w_p, b2d, use_bf16, tile_m, tile_k, prep_tile_m):
    B, N, F_in = x.shape
    Fp = w_p.shape[1]

    # ---- pass 1: degree + scaled support (one row-tiled sweep over adj) ----
    tmp = prep_tile_m or _pick_tile(N, 128, 8)
    prep_cost = pl.CostEstimate(
        flops=2 * B * N * F_in * Fp,
        transcendentals=B * N,
        bytes_accessed=(adj.size * adj.dtype.itemsize
                        + 4 * (x.size + w_p.size + B * N * (Fp + 1))),
    )
    s_mat, d_vec = pl.pallas_call(
        functools.partial(_gcn_prep_kernel, use_bf16=use_bf16),
        out_shape=(jax.ShapeDtypeStruct((B, N, Fp), jnp.float32),
                   jax.ShapeDtypeStruct((B, N, 1), jnp.float32)),
        grid_spec=pltpu.PrefetchScalarGridSpec(
            num_scalar_prefetch=0,
            grid=(B, N // tmp),
            in_specs=[
                pl.BlockSpec((None, tmp, N), lambda b, i: (b, i, 0)),
                pl.BlockSpec((None, tmp, F_in), lambda b, i: (b, i, 0)),
                pl.BlockSpec((F_in, Fp), lambda b, i: (0, 0)),
            ],
            out_specs=[
                pl.BlockSpec((None, tmp, Fp), lambda b, i: (b, i, 0)),
                pl.BlockSpec((None, tmp, 1), lambda b, i: (b, i, 0)),
            ],
        ),
        compiler_params=pltpu.CompilerParams(
            dimension_semantics=("parallel", "parallel"),
            vmem_limit_bytes=_VMEM_LIMIT,
        ),
        cost_estimate=prep_cost,
    )(adj, x, w_p)

    # ---- pass 2: out = d * (adj @ s + s) + bias, adj tiled (tm, tk) --------
    tm = tile_m or _pick_tile(N, 256, 8)
    tk = tile_k or _pick_tile(N, 512, 128)
    agg_cost = pl.CostEstimate(
        flops=2 * B * N * N * Fp,
        transcendentals=0,
        bytes_accessed=(adj.size * adj.dtype.itemsize
                        + 4 * (3 * B * N * Fp + B * N + Fp)),
    )
    return pl.pallas_call(
        functools.partial(_gcn_agg_kernel, use_bf16=use_bf16),
        out_shape=jax.ShapeDtypeStruct((B, N, Fp), jnp.float32),
        grid_spec=pltpu.PrefetchScalarGridSpec(
            num_scalar_prefetch=0,
            grid=(B, N // tm, N // tk),
            in_specs=[
                pl.BlockSpec((None, tm, tk), lambda b, i, k: (b, i, k),
                             pipeline_mode=pl.Buffered(3)),
                pl.BlockSpec((None, tk, Fp), lambda b, i, k: (b, k, 0)),
                pl.BlockSpec((None, tm, Fp), lambda b, i, k: (b, i, 0)),
                pl.BlockSpec((None, tm, 1), lambda b, i, k: (b, i, 0)),
                pl.BlockSpec((1, Fp), lambda b, i, k: (0, 0)),
            ],
            out_specs=pl.BlockSpec((None, tm, Fp), lambda b, i, k: (b, i, 0)),
            scratch_shapes=[pltpu.VMEM((tm, Fp), jnp.float32)],
        ),
        compiler_params=pltpu.CompilerParams(
            dimension_semantics=("parallel", "parallel", "arbitrary"),
            vmem_limit_bytes=_VMEM_LIMIT,
        ),
        cost_estimate=agg_cost,
    )(adj, s_mat, s_mat, d_vec, b2d)


def graph_convolution(inputs, adj, weight, bias=None, *,
                      use_bf16_mxu=False, force_tiled=False,
                      tile_m=None, tile_k=None, prep_tile_m=None):
    """HRNR GraphConvolution forward.

    inputs: (B,N,F_in)  adj: (B,N,N)  weight: (F_in,F_out)  bias: (F_out,)
    Returns (B, N, F_out) float32.
    """
    inputs = jnp.asarray(inputs, jnp.float32)
    adj = jnp.asarray(adj)
    weight = jnp.asarray(weight, jnp.float32)
    B, N, F_in = inputs.shape
    F_out = weight.shape[1]
    if bias is None:
        bias = jnp.zeros((F_out,), jnp.float32)
    bias = jnp.asarray(bias, jnp.float32)

    # Lane-dense output: pad feature axis to a multiple of 128.
    Fp = _round_up(F_out, 128)
    if Fp != F_out:
        weight = jnp.pad(weight, ((0, 0), (0, Fp - F_out)))
        bias = jnp.pad(bias, ((0, Fp - F_out),))
    bias2d = bias.reshape(1, Fp)

    small = (not force_tiled) and (N * N * adj.dtype.itemsize <= _FUSED_ADJ_BYTES)
    if small:
        out = _fused_path(inputs, adj, weight, bias2d, use_bf16_mxu)
    else:
        out = _tiled_path(inputs, adj, weight, bias2d, use_bf16_mxu,
                          tile_m, tile_k, prep_tile_m)
    return out[..., :F_out]


# --------------------------------------------------------------------------
# Pure-JAX reference + self-test
# --------------------------------------------------------------------------
def reference(inputs, adj, weight, bias):
    support = jnp.einsum("bnk,kf->bnf", inputs, weight)
    n = adj.shape[-1]
    adj_post = adj + jnp.eye(n, dtype=adj.dtype)[None]
    deg = jnp.sum(jnp.abs(adj_post), axis=-1)
    d = deg ** -0.5
    norm_adj = d[:, :, None] * adj_post * d[:, None, :]
    return jnp.einsum("bnm,bmf->bnf", norm_adj, support) + bias


if __name__ == "__main__":
    key = jax.random.PRNGKey(0)
    k1, k2, k3, k4, k5 = jax.random.split(key, 5)

    # Small shapes consistent with the HRNR GCN layer.
    B, N, F_in, F_out = 2, 16, 32, 64
    stdv = 0.5
    x = jax.random.normal(k1, (B, N, F_in), dtype=jnp.float32)
    # Include negative adjacency entries to exercise the |.|-degree path.
    adj = jax.random.uniform(k2, (B, N, N), minval=-0.25, maxval=1.0,
                             dtype=jnp.float32)
    w = jax.random.uniform(k3, (F_in, F_out), minval=-stdv, maxval=stdv,
                           dtype=jnp.float32)
    b = jax.random.uniform(k4, (F_out,), minval=-stdv, maxval=stdv,
                           dtype=jnp.float32)

    ref = reference(x, adj, w, b)

    # 1) Fused single-step path (whole batch per grid step).
    out = jax.block_until_ready(graph_convolution(x, adj, w, b))
    assert out.shape == (B, N, F_out)
    assert jnp.allclose(out, ref, atol=1e-4, rtol=1e-4), \
        float(jnp.max(jnp.abs(out - ref)))

    # 2) Tiled two-kernel path (forced; exercises row + contraction tiling).
    N2 = 256
    x2 = jax.random.normal(k5, (B, N2, F_in), dtype=jnp.float32)
    adj2 = jax.random.uniform(k2, (B, N2, N2), minval=-0.25, maxval=1.0,
                              dtype=jnp.float32)
    ref2 = reference(x2, adj2, w, b)
    out2 = jax.block_until_ready(
        graph_convolution(x2, adj2, w, b, force_tiled=True,
                          tile_m=128, tile_k=128, prep_tile_m=128))
    assert jnp.allclose(out2, ref2, atol=2e-3, rtol=2e-3), \
        float(jnp.max(jnp.abs(out2 - ref2)))

    # 3) bf16 MXU-operand path (f32 accumulation), loose tolerance.
    out_bf16 = jax.block_until_ready(
        graph_convolution(x, adj, w, b, use_bf16_mxu=True))
    assert jnp.allclose(out_bf16, ref, atol=5e-2, rtol=5e-2)

    print("KERNEL_OK")
</pallas_src>

<mosaic_0001>
module attributes {stable_mosaic.version = 11 : i64} {
  func.func @_gcn_fused_kernel(%arg0: i32, %arg1: memref<2x16x32xf32, #tpu.memory_space<vmem>>, %arg2: memref<2x16x16xf32, #tpu.memory_space<vmem>>, %arg3: memref<32x128xf32, #tpu.memory_space<vmem>>, %arg4: memref<1x128xf32, #tpu.memory_space<vmem>>, %arg5: memref<2x16x128xf32, #tpu.memory_space<vmem>>) attributes {dimension_semantics = [#tpu.dimension_semantics<parallel>], iteration_bounds = array<i64: 1>, scalar_prefetch = 0 : i64, scratch_operands = 0 : i64, tpu.core_type = #tpu.core_type<tc>, window_params = [{transform_indices = @transform_0, window_bounds = array<i64: 2, 16, 32>}, {transform_indices = @transform_1, window_bounds = array<i64: 2, 16, 16>}, {pipeline_mode = #tpu.pipeline_mode<synchronous>, transform_indices = @transform_2, window_bounds = array<i64: 32, 128>}, {pipeline_mode = #tpu.pipeline_mode<synchronous>, transform_indices = @transform_3, window_bounds = array<i64: 1, 128>}, {transform_indices = @transform_4, window_bounds = array<i64: 2, 16, 128>}]} {
    %c0 = arith.constant 0 : index
    %c0_0 = arith.constant 0 : index
    %c0_1 = arith.constant 0 : index
    %0 = vector.load %arg1[%c0, %c0_0, %c0_1] : memref<2x16x32xf32, #tpu.memory_space<vmem>>, vector<2x16x32xf32>
    %c0_2 = arith.constant 0 : index
    %c0_3 = arith.constant 0 : index
    %c0_4 = arith.constant 0 : index
    %1 = vector.load %arg2[%c0_2, %c0_3, %c0_4] : memref<2x16x16xf32, #tpu.memory_space<vmem>>, vector<2x16x16xf32>
    %c0_5 = arith.constant 0 : index
    %c0_6 = arith.constant 0 : index
    %2 = vector.load %arg3[%c0_5, %c0_6] : memref<32x128xf32, #tpu.memory_space<vmem>>, vector<32x128xf32>
    %c0_7 = arith.constant 0 : index
    %c0_8 = arith.constant 0 : index
    %3 = vector.load %arg4[%c0_7, %c0_8] : memref<1x128xf32, #tpu.memory_space<vmem>>, vector<1x128xf32>
    %4 = tpu.iota {dimensions = array<i32: 0>} : vector<16x16xi32>
    %5 = tpu.iota {dimensions = array<i32: 1>} : vector<16x16xi32>
    %6 = arith.cmpi eq, %4, %5 : vector<16x16xi32>
    %cst = arith.constant 0.000000e+00 : f32
    %7 = vector.shape_cast %6 : vector<16x16xi1> to vector<1x16x16xi1>
    %8 = vector.broadcast %7 : vector<1x16x16xi1> to vector<2x16x16xi1>
    %9 = vector.broadcast %cst : f32 to vector<2x16x16xf32>
    %10 = arith.select %8, %1, %9 : vector<2x16x16xi1>, vector<2x16x16xf32>
    %cst_9 = arith.constant dense<0.000000e+00> : vector<2x16xf32>
    %11 = vector.multi_reduction <add>, %10, %cst_9 [2] : vector<2x16x16xf32> to vector<2x16xf32>
    %12 = vector.shape_cast %11 : vector<2x16xf32> to vector<2x16x1xf32>
    %13 = math.absf %1 : vector<2x16x16xf32>
    %cst_10 = arith.constant dense<0.000000e+00> : vector<2x16xf32>
    %14 = vector.multi_reduction <add>, %13, %cst_10 [2] : vector<2x16x16xf32> to vector<2x16xf32>
    %15 = vector.shape_cast %14 : vector<2x16xf32> to vector<2x16x1xf32>
    %cst_11 = arith.constant 1.000000e+00 : f32
    %16 = vector.broadcast %cst_11 : f32 to vector<2x16x1xf32>
    %17 = arith.addf %12, %16 : vector<2x16x1xf32>
    %18 = math.absf %17 : vector<2x16x1xf32>
    %19 = arith.addf %15, %18 : vector<2x16x1xf32>
    %20 = math.absf %12 : vector<2x16x1xf32>
    %21 = arith.subf %19, %20 : vector<2x16x1xf32>
    %22 = math.rsqrt %21 : vector<2x16x1xf32>
    %23 = vector.shape_cast %0 : vector<2x16x32xf32> to vector<32x32xf32>
    %cst_12 = arith.constant dense<0.000000e+00> : vector<32x128xf32>
    %24 = tpu.matmul %23, %2, %cst_12 {dimension_numbers = #tpu.dot_dimension_numbers<[1], [0], [0], [1], [0, 0, 1, 1], [], []>} : vector<32x32xf32>, vector<32x128xf32>, vector<32x128xf32> -> vector<32x128xf32>
    %25 = vector.shape_cast %24 : vector<32x128xf32> to vector<2x16x128xf32>
    %26 = vector.broadcast %22 : vector<2x16x1xf32> to vector<2x16x128xf32>
    %27 = arith.mulf %26, %25 : vector<2x16x128xf32>
    "tpu.trace_start"() <{level = 10 : i32, message = "bnm,bmf->bnf"}> : () -> ()
    %cst_13 = arith.constant dense<0.000000e+00> : vector<2x16x128xf32>
    %28 = tpu.matmul %1, %27, %cst_13 {dimension_numbers = #tpu.dot_dimension_numbers<[2], [1], [1], [2], [0, 0, 0, 1, 1, 2], [0], [0]>} : vector<2x16x16xf32>, vector<2x16x128xf32>, vector<2x16x128xf32> -> vector<2x16x128xf32>
    "tpu.trace_stop"() : () -> ()
    %29 = arith.addf %28, %27 : vector<2x16x128xf32>
    %30 = vector.broadcast %22 : vector<2x16x1xf32> to vector<2x16x128xf32>
    %31 = arith.mulf %30, %29 : vector<2x16x128xf32>
    %32 = vector.shape_cast %3 : vector<1x128xf32> to vector<1x1x128xf32>
    %33 = vector.broadcast %32 : vector<1x1x128xf32> to vector<2x16x128xf32>
    %34 = arith.addf %31, %33 : vector<2x16x128xf32>
    %c0_14 = arith.constant 0 : index
    %c0_15 = arith.constant 0 : index
    %c0_16 = arith.constant 0 : index
    %35 = vector.load %arg5[%c0_14, %c0_15, %c0_16] : memref<2x16x128xf32, #tpu.memory_space<vmem>>, vector<2x16x128xf32>
    tpu.vector_store %arg5[%c0_14, %c0_15, %c0_16], %34 {strides = array<i32>} : memref<2x16x128xf32, #tpu.memory_space<vmem>>, vector<2x16x128xf32>,
    return
  }
  func.func @transform_0(%arg0: i32) -> (i32, i32, i32) {
    %c0_i32 = arith.constant 0 : i32
    %c0_i32_0 = arith.constant 0 : i32
    %c0_i32_1 = arith.constant 0 : i32
    return %arg0, %c0_i32, %c0_i32_0 : i32, i32, i32
  }
  func.func @transform_1(%arg0: i32) -> (i32, i32, i32) {
    %c0_i32 = arith.constant 0 : i32
    %c0_i32_0 = arith.constant 0 : i32
    %c0_i32_1 = arith.constant 0 : i32
    return %arg0, %c0_i32, %c0_i32_0 : i32, i32, i32
  }
  func.func @transform_2(%arg0: i32) -> (i32, i32) {
    %c0_i32 = arith.constant 0 : i32
    %c0_i32_0 = arith.constant 0 : i32
    %c0_i32_1 = arith.constant 0 : i32
    return %c0_i32, %c0_i32_0 : i32, i32
  }
  func.func @transform_3(%arg0: i32) -> (i32, i32) {
    %c0_i32 = arith.constant 0 : i32
    %c0_i32_0 = arith.constant 0 : i32
    %c0_i32_1 = arith.constant 0 : i32
    return %c0_i32, %c0_i32_0 : i32, i32
  }
  func.func @transform_4(%arg0: i32) -> (i32, i32, i32) {
    %c0_i32 = arith.constant 0 : i32
    %c0_i32_0 = arith.constant 0 : i32
    %c0_i32_1 = arith.constant 0 : i32
    return %arg0, %c0_i32, %c0_i32_0 : i32, i32, i32
  }
}

</mosaic_0001>

<bundles_post_ra>
// kernel: tpu_custom_call.1
= control target key start
LH: loop header
LB: loop body
LE: loop exit
PB: predicated region body
PF: predicated region fallthrough
CT: control target
= control target key end

     0   :  { %9 = vsyncpa [#allocation3], 0  ;;  %s546_s0 = inlined_call_operand.hbm [shape: f32[2,16,32], index: 0, kind: input, shape index: {}]   ;;  %s547_s1 = inlined_call_operand.hbm [shape: f32[2,16,16], index: 1, kind: input, shape index: {}]   ;;  %s548_s2 = inlined_call_operand.hbm [shape: f32[32,128], index: 2, kind: input, shape index: {}]   ;;  %s549_s3 = inlined_call_operand.vmem [shape: f32[1,128], index: 3, kind: input, shape index: {}]   ;;  %s550_s4 = inlined_call_operand.hbm [shape: f32[2,16,128], index: 4, kind: output, shape index: {}]  }
   0x1   :  { %10 = vsyncpa [#allocation6], 0 }
   0x2   :  { %11 = vsyncpa [#allocation4], 0  ;;  %s29_s17 = sshll.u32 %s547_s1, 4  ;;  %s450_s18 = smov [#allocation5]   ;;  %s30_s17 = int_to_ptr.hbm [resolvable:$true] %s29_s17 }
   0x3   :  { %s31_s19 = sshll.u32 %s450_s18, 4  ;;  %s16_s22 = sshll.u32 %s546_s0, 4  ;;  %s32_s19 = int_to_ptr.vmem [resolvable:$true] %s31_s19  ;;  %s17_s22 = int_to_ptr.hbm [resolvable:$true] %s16_s22 }
   0x4   :  { %s451_s23 = smov 128   ;;  %s452_s24 = smov 8  }
   0x5   :  { %37 = dma.hbm_to_vmem [thread:$0]  %s30_s17, 512, %s32_s19, [#allocation6], %s451_s23, %s451_s23, %s452_s24  }
   0x6   :  { %s453_s25 = smov [#allocation2]   ;;  %s42_s1 = sshll.u32 %s548_s2, 4  ;;  %s43_s1 = int_to_ptr.hbm [resolvable:$true] %s42_s1 }
   0x7   :  { %s18_s26 = sshll.u32 %s453_s25, 4  ;;  %s454_s0 = smov [#allocation7]   ;;  %s19_s26 = int_to_ptr.vmem [resolvable:$true] %s18_s26 }
   0x8   :  { %24 = dma.hbm_to_vmem [thread:$0]  %s17_s22, 512, %s19_s26, [#allocation3], %s451_s23, %s451_s23, %s452_s24  }
   0x9   :  { %s44_s29 = sshll.u32 %s454_s0, 4  ;;  %s45_s29 = int_to_ptr.vmem [resolvable:$true] %s44_s29 }
   0xa   :  { %50 = dma.hbm_to_vmem [thread:$0]  %s43_s1, 512, %s45_s29, [#allocation6], %s451_s23, %s451_s23, %s452_s24  }
   0xb   :  { %444 = dma.done.wait [#allocation3], 512  }
   0xc   :  { %445 = vsyncadd [#allocation3], 4294966784 }
   0xd   :  { %446 = dma.done.wait [#allocation6], 1024  }
   0xe   :  { %447 = vsyncadd [#allocation6], 4294966272  ;;  %v78_v0 = vlaneseq  ;;  %vm93_vm1 = vcmask 130048   ;;  %v76_v4 = vld [vmem:[#allocation7 + $0x18] sm:$0xff]  ;;  %v501_v6 = vld [vmem:[#allocation5 + $0x8] sm:$0xff]  ;;  %vm182_vm3 = vcmask 261120  }
   0xf   :  { %v499_v5 = vld [vmem:[#allocation5 + $0x18] sm:$0xff]  ;;  %329 = vmatpush.msra.mxu3 %v76_v4  ;;  %v75_v9 = vld [vmem:[#allocation7 + $0x10] sm:$0xff]  ;;  %207 = vmatpush.msra.mxu0 %v76_v4  ;;  %v74_v14 = vld [vmem:[#allocation7 + $0x8] sm:$0xff]  ;;  %v107_v26 = vand.u32 2147483647, %v501_v6  ;;  %s455_s5 = smov [#allocation8]  }
  0x10   :  { %v79_v1 = vshrl.u32 %v78_v0, 7  ;;  %v82_v2 = vand.u32 127, %v78_v0  ;;  %v505_v10 = vld [vmem:[#allocation5 + $0x10] sm:$0xff]  ;;  %v109_v16 = vand.u32 2147483647, %v499_v5  ;;  %v512_v17 = vld [vmem:[#allocation5] sm:$0xff] }
  0x11   :  { %v108_v13 = vand.u32 2147483647, %v505_v10  ;;  %330 = vmatpush.msra.mxu3 %v75_v9  ;;  %208 = vmatpush.msra.mxu0 %v75_v9  ;;  %v73_v18 = vld [vmem:[#allocation7] sm:$0xff]  ;;  %v67_v20 = vld [vmem:[#allocation2 + $0x10] sm:$0xff]  ;;  %v106_v27 = vand.u32 2147483647, %v512_v17 }
  0x12   :  { %v80_v3 = vadd.s32 8, %v79_v1  ;;  %vm83_vm2 = vcmp.eq.s32.totalorder %v79_v1, %v82_v2  ;;  %v65_v21 = vld [vmem:[#allocation2] sm:$0xff]  ;;  %v119_v24 = vsel %vm93_vm1, %v109_v16, 0.0  ;;  %v68_v28 = vld [vmem:[#allocation2 + $0x18] sm:$0xff]  ;;  %v66_v29 = vld [vmem:[#allocation2 + $0x8] sm:$0xff]  ;;  %v113_v30 = vsel %vm93_vm1, %v107_v26, 0.0 }
  0x13   :  { %v116_v15 = vsel %vm93_vm1, %v108_v13, 0.0  ;;  %v91_v19 = vsel %vm83_vm2, %v505_v10, 0.0  ;;  %331 = vmatpush.msra.mxu3 %v74_v14  ;;  %209 = vmatpush.msra.mxu0 %v74_v14  ;;  %v89_v22 = vsel %vm83_vm2, %v512_v17, 0.0  ;;  %v110_v31 = vsel %vm93_vm1, %v106_v27, 0.0  ;;  %s305_s6 = sshll.u32 %s455_s5, 4  ;;  %s307_s9 = sshll.u32 %s550_s4, 4  ;;  %s306_s6 = int_to_ptr.vmem [resolvable:$true] %s305_s6  ;;  %s308_s9 = int_to_ptr.hbm [resolvable:$true] %s307_s9 }
  0x14   :  { %vm84_vm0 = vcmp.eq.s32.totalorder %v80_v3, %v82_v2  ;;  %117 = vadd.xlane.f32.xlu2 %v116_v15  ;;  %v100_v23 = vsel %vm93_vm1, %v91_v19, 0.0  ;;  %v94_v25 = vsel %vm93_vm1, %v89_v22, 0.0 }
  0x15   :  { %v92_v7 = vsel %vm84_vm0, %v499_v5, 0.0  ;;  %v90_v8 = vsel %vm84_vm0, %v501_v6, 0.0  ;;  %332 = vmatpush.msra.mxu3 %v73_v18  ;;  %210 = vmatpush.msra.mxu0 %v73_v18 }
  0x16   :  { %v103_v11 = vsel %vm93_vm1, %v92_v7, 0.0  ;;  %v97_v12 = vsel %vm93_vm1, %v90_v8, 0.0  ;;  %323 = vmatmul.msk.f32.vlgmr.msra.gmra.mxu3 %vm182_vm3, %v67_v20  ;;  %321 = vmatmul.msk.f32.vlgmr.msra.gmra.mxu0 %vm182_vm3, %v65_v21 }
  0x17   :  { %104 = vadd.xlane.f32.xlu0 %v103_v11  ;;  %98 = vadd.xlane.f32.xlu1 %v97_v12 }
  0x1c   :  { %95 = vadd.xlane.f32.xlu2 %v94_v25 }
  0x1e   :  { %324 = vmatmul.msk.f32.gmra.mxu3 %vm182_vm3, %v68_v28  ;;  %322 = vmatmul.msk.f32.gmra.mxu0 %vm182_vm3, %v66_v29 }
  0x1f   :  { %101 = vadd.xlane.f32.xlu0 %v100_v23  ;;  %120 = vadd.xlane.f32.xlu1 %v119_v24 }
  0x27   :  { %114 = vadd.xlane.f32.xlu0 %v113_v30  ;;  %111 = vadd.xlane.f32.xlu1 %v110_v31 }
  0x87   :  { %v118_v34 = vpop.xlane.xlu2 %117 }
  0x8a   :  { %v105_v32 = vpop.xlane.xlu0 %104  ;;  %v99_v33 = vpop.xlane.xlu1 %98 }
  0x8b   :  { %v125_v35 = vadd.f32 1.0, %v105_v32  ;;  %v137_v39 = vand.u32 2147483647, %v105_v32  ;;  %v123_v43 = vadd.f32 1.0, %v99_v33  ;;  %v135_v52 = vand.u32 2147483647, %v99_v33 }
  0x8d   :  { %v129_v36 = vand.u32 2147483647, %v125_v35  ;;  %v127_v50 = vand.u32 2147483647, %v123_v43 }
  0x8f   :  { %v96_v42 = vpop.xlane.xlu2 %95 }
  0x90   :  { %v122_v46 = vadd.f32 1.0, %v96_v42  ;;  %v134_v55 = vand.u32 2147483647, %v96_v42 }
  0x92   :  { %v102_v37 = vpop.xlane.xlu0 %101  ;;  %v121_v38 = vpop.xlane.xlu1 %120  ;;  %v126_v49 = vand.u32 2147483647, %v122_v46 }
  0x93   :  { %v124_v40 = vadd.f32 1.0, %v102_v37  ;;  %v133_v41 = vadd.f32 %v129_v36, %v121_v38  ;;  %v136_v48 = vand.u32 2147483647, %v102_v37  ;;  %v212_v4 = vpop.f32.mrf.mxu0 }
  0x95   :  { %v128_v44 = vand.u32 2147483647, %v124_v40  ;;  %v141_v45 = vsub.f32 %v133_v41, %v137_v39 }
  0x97   :  { %v132_v47 = vadd.f32 %v128_v44, %v118_v34  ;;  %340 = vrsqrt.f32 %v141_v45  ;;  %vm178_vm5 = vweird.f32 %v141_v45 }
  0x99   :  { %v140_v51 = vsub.f32 %v132_v47, %v136_v48  ;;  %v218_v62 = vpop.f32.mrf.mxu3 }
  0x9a   :  { %v115_v53 = vpop.xlane.xlu0 %114  ;;  %v112_v54 = vpop.xlane.xlu1 %111 }
  0x9b   :  { %342 = vrsqrt.f32 %v140_v51  ;;  %v131_v56 = vadd.f32 %v127_v50, %v115_v53  ;;  %v130_v57 = vadd.f32 %v126_v49, %v112_v54  ;;  %vm168_vm8 = vweird.f32 %v140_v51  ;;  %v215_v30 = vpop.f32.mrf.mxu0 }
  0x9d   :  { %v341_v58 = vpop.eup %340  ;;  %v139_v59 = vsub.f32 %v131_v56, %v135_v52  ;;  %v138_v60 = vsub.f32 %v130_v57, %v134_v55 }
  0x9e   :  { %v173_v61 = vmul.f32 %v341_v58, %v141_v45  ;;  %vm179_vm4 = vweird.f32 %v341_v58 }
  0x9f   :  { %344 = vrsqrt.f32 %v139_v59  ;;  %vm180_vm6 = vmor %vm178_vm5, %vm179_vm4  ;;  %vm158_vm12 = vweird.f32 %v139_v59  ;;  %vm148_vm13 = vweird.f32 %v138_v60 }
  0xa0   :  { %346 = vrsqrt.f32 %v138_v60  ;;  %v174_v63 = vmul.f32 %v341_v58, %v173_v61 }
  0xa1   :  { %v343_v0 = vpop.eup %342  ;;  %v221_v18 = vpop.f32.mrf.mxu3 }
  0xa2   :  { %v163_v1 = vmul.f32 %v343_v0, %v140_v51  ;;  %v175_v2 = vmul.f32 0.5, %v174_v63  ;;  %vm169_vm7 = vweird.f32 %v343_v0 }
  0xa3   :  { %vm170_vm9 = vmor %vm168_vm8, %vm169_vm7 }
  0xa4   :  { %v164_v3 = vmul.f32 %v343_v0, %v163_v1  ;;  %v176_v7 = vsub.f32 1.5, %v175_v2 }
  0xa5   :  { %v345_v8 = vpop.eup %344 }
  0xa6   :  { %v347_v9 = vpop.eup %346  ;;  %v153_v11 = vmul.f32 %v345_v8, %v139_v59  ;;  %v165_v12 = vmul.f32 0.5, %v164_v3  ;;  %v177_v13 = vmul.f32 %v341_v58, %v176_v7  ;;  %vm159_vm10 = vweird.f32 %v345_v8 }
  0xa7   :  { %v143_v14 = vmul.f32 %v347_v9, %v138_v60  ;;  %vm149_vm11 = vweird.f32 %v347_v9  ;;  %vm160_vm14 = vmor %vm158_vm12, %vm159_vm10 }
  0xa8   :  { %v166_v15 = vsub.f32 1.5, %v165_v12  ;;  %v181_v16 = vsel %vm180_vm6, %v341_v58, %v177_v13  ;;  %v154_v19 = vmul.f32 %v345_v8, %v153_v11  ;;  %vm150_vm15 = vmor %vm148_vm13, %vm149_vm11 }
  0xa9   :  { %v144_v20 = vmul.f32 %v347_v9, %v143_v14  ;;  %v227_v21 = vmul.f32 %v221_v18, %v181_v16 }
  0xaa   :  { %v167_v22 = vmul.f32 %v343_v0, %v166_v15  ;;  %v155_v23 = vmul.f32 0.5, %v154_v19 }
  0xab   :  { %v145_v24 = vmul.f32 0.5, %v144_v20  ;;  %277 = vmatpush.msra.mxu2 %v227_v21 }
  0xac   :  { %v171_v25 = vsel %vm170_vm9, %v343_v0, %v167_v22  ;;  %v156_v26 = vsub.f32 1.5, %v155_v23 }
  0xad   :  { %v226_v27 = vmul.f32 %v218_v62, %v171_v25  ;;  %v146_v28 = vsub.f32 1.5, %v145_v24 }
  0xae   :  { %v157_v29 = vmul.f32 %v345_v8, %v156_v26 }
  0xaf   :  { %v147_v31 = vmul.f32 %v347_v9, %v146_v28  ;;  %278 = vmatpush.msra.mxu2 %v226_v27 }
  0xb0   :  { %v161_v32 = vsel %vm160_vm14, %v345_v8, %v157_v29  ;;  %327 = vmatmul.msk.f32.vlgmr.msra.gmra.mxu2 %vm93_vm1, %v505_v10  ;;  %v339_v10 = vld [vmem:[%s549_s3] ss:$0 sm:$0xff] }
  0xb1   :  { %v151_v33 = vsel %vm150_vm15, %v347_v9, %v147_v31  ;;  %v225_v34 = vmul.f32 %v215_v30, %v161_v32 }
  0xb2   :  { %v224_v35 = vmul.f32 %v212_v4, %v151_v33 }
  0xb3   :  { %248 = vmatpush.msra.mxu1 %v225_v34 }
  0xb5   :  { %249 = vmatpush.msra.mxu1 %v224_v35 }
  0xb6   :  { %325 = vmatmul.msk.f32.vlgmr.msra.gmra.mxu1 %vm93_vm1, %v512_v17 }
  0xb8   :  { %328 = vmatmul.msk.f32.gmra.mxu2 %vm93_vm1, %v499_v5 }
  0xbe   :  { %326 = vmatmul.msk.f32.gmra.mxu1 %vm93_vm1, %v501_v6 }
 0x133   :  { %v251_v36 = vpop.f32.mrf.mxu1  ;;  %v280_v37 = vpop.f32.mrf.mxu2 }
 0x134   :  { %v252_v38 = vadd.f32 %v251_v36, %v224_v35  ;;  %v281_v39 = vadd.f32 %v280_v37, %v226_v27 }
 0x136   :  { %v286_v40 = vmul.f32 %v252_v38, %v151_v33  ;;  %v288_v41 = vmul.f32 %v281_v39, %v171_v25 }
 0x138   :  { %v293_v42 = vadd.f32 %v339_v10, %v286_v40  ;;  %v295_v43 = vadd.f32 %v339_v10, %v288_v41 }
 0x13a   :  { %297 = vst [vmem:[#allocation8] sm:$0xff] %v293_v42 }
 0x13b   :  { %299 = vst [vmem:[#allocation8 + $0x10] sm:$0xff] %v295_v43  ;;  %v254_v17 = vpop.f32.mrf.mxu1  ;;  %v283_v44 = vpop.f32.mrf.mxu2 }
 0x13c   :  { %v255_v5 = vadd.f32 %v254_v17, %v225_v34  ;;  %v284_v45 = vadd.f32 %v283_v44, %v227_v21 }
 0x13e   :  { %v287_v46 = vmul.f32 %v255_v5, %v161_v32  ;;  %v289_v6 = vmul.f32 %v284_v45, %v181_v16 }
 0x140   :  { %v294_v47 = vadd.f32 %v339_v10, %v287_v46  ;;  %v296_v48 = vadd.f32 %v339_v10, %v289_v6 }
 0x142   :  { %298 = vst [vmem:[#allocation8 + $0x8] sm:$0xff] %v294_v47 }
 0x143   :  { %300 = vst [vmem:[#allocation8 + $0x18] sm:$0xff] %v296_v48 }
 0x144   :  { %313 = dma.vmem_to_hbm [thread:$0]  %s306_s6, 512, %s308_s9, [#allocation4], %s451_s23, %s451_s23, %s452_s24  }
 0x145   :  { %448 = dma.done.wait [#allocation4], 512  }
 0x146   :  { %449 = vsyncadd [#allocation4], 4294966784 }
 0x147   :  { %318 = vsyncpa [#allocation3], 1 }
 0x148   :  { %319 = vsyncpa [#allocation6], 1 }
 0x149   :  { %320 = vsyncpa [#allocation4], 1 }

</bundles_post_ra>
